<compile_context>
chip_gen: v7x
topology: tpu7x:2x2x1
jax: 0.10.0
libtpu: 0.0.40
codegen_flags: <defaults>
</compile_context>

<pallas_src>
import functools

import jax
import jax.numpy as jnp
from jax.experimental import pallas as pl
from jax.experimental.pallas import tpu as pltpu


def _round_up(x, m):
    return (x + m - 1) // m * m


def _ffn_kernel(x_ref, w1t_ref, b1_ref, w2t_ref, b2_ref, o_ref):
    """One (tm, Hp) row tile of: out = x + relu(x @ W1^T + b1) @ W2^T + b2."""
    x = x_ref[...]                                    # io dtype (original), (tm, Hp)

    # conv1 (1x1) == x @ W1^T ; MXU inputs in the weights' dtype, f32 accumulation.
    h = jnp.dot(x.astype(w1t_ref.dtype), w1t_ref[...],
                preferred_element_type=jnp.float32)
    # bias + ReLU (dropout1 = identity in eval mode); elementwise kept in f32.
    h = jnp.maximum(h + b1_ref[...], 0.0)

    # conv2 (1x1) == h @ W2^T ; dropout2 = identity.
    y = jnp.dot(h.astype(w2t_ref.dtype), w2t_ref[...],
                preferred_element_type=jnp.float32)

    # bias + residual add in f32, store in the output (= input) dtype.
    o_ref[...] = (y + b2_ref[...] + x.astype(jnp.float32)).astype(o_ref.dtype)


def pointwise_feedforward(inputs, w1, b1, w2, b2, *, tm=None,
                          matmul_dtype=jnp.bfloat16,
                          vmem_budget_bytes=14 * 2**20):
    """SASRec PointWiseFeedForward forward (eval-mode dropout = identity).

    inputs: (B, L, H). w1, w2: (H, H) Conv1d weights (out_ch, in_ch). b1, b2: (H,).
    Output has the same dtype as `inputs`.
    """
    B, L, H = inputs.shape
    M = B * L
    orig_dtype = inputs.dtype

    # ---- Lane packing / padding -------------------------------------------------
    # Small-H packing: put G = 128//H independent rows into one 128-lane row and use
    # block-diagonal weights, so no HBM byte / MXU lane is spent on zero padding.
    G = 1
    if H < 128 and 128 % H == 0 and M % (128 // H) == 0:
        G = 128 // H
    Mg = M // G
    Hg = G * H
    Hp = _round_up(Hg, 128)            # == 128 when packed; lane-pad only as fallback

    x2d = inputs.reshape(Mg, Hg)       # contiguous row-major -> free view, keeps dtype
    if Hp != Hg:
        # Fallback when H doesn't pack into 128 lanes. Zero padding is
        # semantics-preserving (zero weight rows/cols and biases keep padded lanes 0).
        x2d = jnp.pad(x2d, ((0, 0), (0, Hp - Hg)))

    def pack_weight(w):
        wt = jnp.transpose(w).astype(jnp.float32)            # (H, H): x @ W^T layout
        if G > 1:
            wt = jnp.kron(jnp.eye(G, dtype=jnp.float32), wt)  # block-diagonal, (Hg, Hg)
        return jnp.pad(wt, ((0, Hp - Hg), (0, Hp - Hg))).astype(matmul_dtype)

    def pack_bias(b):
        bb = jnp.tile(b.astype(jnp.float32), G)
        return jnp.pad(bb, (0, Hp - Hg)).reshape(1, Hp)

    w1t, w2t = pack_weight(w1), pack_weight(w2)
    b1r, b2r = pack_bias(b1), pack_bias(b2)

    # ---- Row-tile selection -------------------------------------------------------
    io_b = jnp.dtype(orig_dtype).itemsize
    w_b = jnp.dtype(matmul_dtype).itemsize
    # double-buffered in + out tiles plus ~6 f32-equivalent row temporaries in-kernel
    row_bytes = Hp * (2 * io_b + 2 * io_b + 6 * 4)
    tm_cap = 1024
    while tm_cap > 64 and tm_cap * row_bytes + 2 * Hp * Hp * w_b > vmem_budget_bytes:
        tm_cap //= 2
    if tm is None:
        tm = tm_cap
    tm = _round_up(max(8, min(int(tm), tm_cap)), 8)
    if Mg <= tm:
        if Mg > 16:
            # Split into ~2 balanced blocks: v7x shards the "parallel" axis over 2 TCs.
            tm = _round_up(pl.cdiv(Mg, 2), 8)
        else:
            tm = Mg                      # tiny problem: single full-extent block
    grid = (pl.cdiv(Mg, tm),)            # partial tail block allowed; no M padding

    cost = pl.CostEstimate(
        flops=4 * Mg * Hp * Hp,                                # two (Mg,Hp)x(Hp,Hp) matmuls
        transcendentals=0,
        bytes_accessed=2 * Mg * Hp * io_b + 2 * Hp * Hp * w_b + 2 * Hp * 4,
    )

    out2d = pl.pallas_call(
        _ffn_kernel,
        out_shape=jax.ShapeDtypeStruct((Mg, Hp), orig_dtype),
        grid_spec=pltpu.PrefetchScalarGridSpec(
            num_scalar_prefetch=0,
            grid=grid,
            in_specs=[
                # streamed x row tile (default double buffering)
                pl.BlockSpec((tm, Hp), lambda i: (i, 0)),
                # resident weights: constant index_map, single buffer saves VMEM
                pl.BlockSpec((Hp, Hp), lambda i: (0, 0),
                             pipeline_mode=pl.Buffered(1)),
                pl.BlockSpec((1, Hp), lambda i: (0, 0)),       # b1
                pl.BlockSpec((Hp, Hp), lambda i: (0, 0),
                             pipeline_mode=pl.Buffered(1)),
                pl.BlockSpec((1, Hp), lambda i: (0, 0)),       # b2
            ],
            out_specs=pl.BlockSpec((tm, Hp), lambda i: (i, 0)),
        ),
        compiler_params=pltpu.CompilerParams(
            dimension_semantics=("parallel",)),
        cost_estimate=cost,
    )(x2d, w1t, b1r, w2t, b2r)

    if Hp != Hg:
        out2d = out2d[:, :Hg]            # drop zero lanes (fallback path only)
    return out2d.reshape(B, L, H)        # free view; dtype already == inputs.dtype


def _reference(x, w1, b1, w2, b2):
    # Pure-JAX reference matching the PyTorch forward (eval-mode dropout = identity).
    h = jnp.maximum(jnp.einsum("blh,oh->blo", x, w1) + b1, 0.0)
    return jnp.einsum("blh,oh->blo", h, w2) + b2 + x


if __name__ == "__main__":
    key = jax.random.PRNGKey(0)

    def make_case(k, B, L, H):
        k_x, k_w1, k_b1, k_w2, k_b2 = jax.random.split(k, 5)
        bound = 1.0 / (H ** 0.5)
        x = jax.random.normal(k_x, (B, L, H), dtype=jnp.float32)
        w1 = jax.random.uniform(k_w1, (H, H), minval=-bound, maxval=bound, dtype=jnp.float32)
        b1 = jax.random.uniform(k_b1, (H,), minval=-bound, maxval=bound, dtype=jnp.float32)
        w2 = jax.random.uniform(k_w2, (H, H), minval=-bound, maxval=bound, dtype=jnp.float32)
        b2 = jax.random.uniform(k_b2, (H,), minval=-bound, maxval=bound, dtype=jnp.float32)
        return x, w1, b1, w2, b2

    ffn_f32 = jax.jit(functools.partial(pointwise_feedforward, matmul_dtype=jnp.float32))
    ffn_bf16 = jax.jit(pointwise_feedforward)

    # 1) Small-H packed path (H=32 -> G=4 rows per lane-row), f32 matmuls: exact math.
    args = make_case(jax.random.fold_in(key, 0), B=2, L=8, H=32)
    ref = _reference(*args)
    out = jax.block_until_ready(ffn_f32(*args))
    assert out.shape == (2, 8, 32) and out.dtype == args[0].dtype
    assert jnp.allclose(out, ref, atol=1e-4, rtol=1e-4), "packed f32 path mismatch"

    # 2) Same case, default bf16-MXU path (f32 accumulation, f32 residual).
    out = jax.block_until_ready(ffn_bf16(*args))
    assert jnp.allclose(out, ref, atol=2e-2, rtol=2e-2), "packed bf16 path mismatch"

    # 3) bf16 activations streamed end-to-end (output comes back in bf16).
    x_bf16 = args[0].astype(jnp.bfloat16)
    out = jax.block_until_ready(ffn_bf16(x_bf16, *args[1:]))
    ref_bf16 = _reference(x_bf16.astype(jnp.float32), *args[1:])
    assert out.dtype == jnp.bfloat16 and out.shape == (2, 8, 32)
    assert jnp.allclose(out.astype(jnp.float32), ref_bf16, atol=6e-2, rtol=6e-2), \
        "bf16 I/O path mismatch"

    # 4) Fallback lane-padded path with a partial tail row block (H=48, M=21, tm=16).
    args = make_case(jax.random.fold_in(key, 1), B=3, L=7, H=48)
    ref = _reference(*args)
    out = jax.block_until_ready(ffn_f32(*args))
    assert out.shape == (3, 7, 48)
    assert jnp.allclose(out, ref, atol=1e-4, rtol=1e-4), "padded f32 path mismatch"

    print("KERNEL_OK")
</pallas_src>

<mosaic_0001>
module attributes {stable_mosaic.version = 11 : i64} {
  func.func @_ffn_kernel(%arg0: i32, %arg1: memref<4x128xf32, #tpu.memory_space<vmem>>, %arg2: memref<128x128xf32, #tpu.memory_space<vmem>>, %arg3: memref<1x128xf32, #tpu.memory_space<vmem>>, %arg4: memref<128x128xf32, #tpu.memory_space<vmem>>, %arg5: memref<1x128xf32, #tpu.memory_space<vmem>>, %arg6: memref<4x128xf32, #tpu.memory_space<vmem>>) attributes {dimension_semantics = [#tpu.dimension_semantics<parallel>], iteration_bounds = array<i64: 1>, scalar_prefetch = 0 : i64, scratch_operands = 0 : i64, tpu.core_type = #tpu.core_type<tc>, window_params = [{transform_indices = @transform_0, window_bounds = array<i64: 4, 128>}, {pipeline_mode = #tpu.pipeline_mode<synchronous>, transform_indices = @transform_1, window_bounds = array<i64: 128, 128>}, {pipeline_mode = #tpu.pipeline_mode<synchronous>, transform_indices = @transform_2, window_bounds = array<i64: 1, 128>}, {pipeline_mode = #tpu.pipeline_mode<synchronous>, transform_indices = @transform_3, window_bounds = array<i64: 128, 128>}, {pipeline_mode = #tpu.pipeline_mode<synchronous>, transform_indices = @transform_4, window_bounds = array<i64: 1, 128>}, {transform_indices = @transform_5, window_bounds = array<i64: 4, 128>}]} {
    %c0 = arith.constant 0 : index
    %c0_0 = arith.constant 0 : index
    %0 = vector.load %arg1[%c0, %c0_0] : memref<4x128xf32, #tpu.memory_space<vmem>>, vector<4x128xf32>
    %c0_1 = arith.constant 0 : index
    %c0_2 = arith.constant 0 : index
    %1 = vector.load %arg2[%c0_1, %c0_2] : memref<128x128xf32, #tpu.memory_space<vmem>>, vector<128x128xf32>
    %cst = arith.constant dense<0.000000e+00> : vector<4x128xf32>
    %2 = tpu.matmul %0, %1, %cst {dimension_numbers = #tpu.dot_dimension_numbers<[1], [0], [0], [1], [0, 0, 1, 1], [], []>} : vector<4x128xf32>, vector<128x128xf32>, vector<4x128xf32> -> vector<4x128xf32>
    %c0_3 = arith.constant 0 : index
    %c0_4 = arith.constant 0 : index
    %3 = vector.load %arg3[%c0_3, %c0_4] : memref<1x128xf32, #tpu.memory_space<vmem>>, vector<1x128xf32>
    %4 = vector.broadcast %3 : vector<1x128xf32> to vector<4x128xf32>
    %5 = arith.addf %2, %4 : vector<4x128xf32>
    %cst_5 = arith.constant 0.000000e+00 : f32
    %6 = vector.broadcast %cst_5 : f32 to vector<4x128xf32>
    %7 = arith.maximumf %5, %6 : vector<4x128xf32>
    %c0_6 = arith.constant 0 : index
    %c0_7 = arith.constant 0 : index
    %8 = vector.load %arg4[%c0_6, %c0_7] : memref<128x128xf32, #tpu.memory_space<vmem>>, vector<128x128xf32>
    %cst_8 = arith.constant dense<0.000000e+00> : vector<4x128xf32>
    %9 = tpu.matmul %7, %8, %cst_8 {dimension_numbers = #tpu.dot_dimension_numbers<[1], [0], [0], [1], [0, 0, 1, 1], [], []>} : vector<4x128xf32>, vector<128x128xf32>, vector<4x128xf32> -> vector<4x128xf32>
    %c0_9 = arith.constant 0 : index
    %c0_10 = arith.constant 0 : index
    %10 = vector.load %arg5[%c0_9, %c0_10] : memref<1x128xf32, #tpu.memory_space<vmem>>, vector<1x128xf32>
    %11 = vector.broadcast %10 : vector<1x128xf32> to vector<4x128xf32>
    %12 = arith.addf %9, %11 : vector<4x128xf32>
    %13 = arith.addf %12, %0 : vector<4x128xf32>
    %c0_11 = arith.constant 0 : index
    %c0_12 = arith.constant 0 : index
    %14 = vector.load %arg6[%c0_11, %c0_12] : memref<4x128xf32, #tpu.memory_space<vmem>>, vector<4x128xf32>
    tpu.vector_store %arg6[%c0_11, %c0_12], %13 {strides = array<i32>} : memref<4x128xf32, #tpu.memory_space<vmem>>, vector<4x128xf32>,
    return
  }
  func.func @transform_0(%arg0: i32) -> (i32, i32) {
    %c0_i32 = arith.constant 0 : i32
    %c0_i32_0 = arith.constant 0 : i32
    return %arg0, %c0_i32 : i32, i32
  }
  func.func @transform_1(%arg0: i32) -> (i32, i32) {
    %c0_i32 = arith.constant 0 : i32
    %c0_i32_0 = arith.constant 0 : i32
    %c0_i32_1 = arith.constant 0 : i32
    return %c0_i32, %c0_i32_0 : i32, i32
  }
  func.func @transform_2(%arg0: i32) -> (i32, i32) {
    %c0_i32 = arith.constant 0 : i32
    %c0_i32_0 = arith.constant 0 : i32
    %c0_i32_1 = arith.constant 0 : i32
    return %c0_i32, %c0_i32_0 : i32, i32
  }
  func.func @transform_3(%arg0: i32) -> (i32, i32) {
    %c0_i32 = arith.constant 0 : i32
    %c0_i32_0 = arith.constant 0 : i32
    %c0_i32_1 = arith.constant 0 : i32
    return %c0_i32, %c0_i32_0 : i32, i32
  }
  func.func @transform_4(%arg0: i32) -> (i32, i32) {
    %c0_i32 = arith.constant 0 : i32
    %c0_i32_0 = arith.constant 0 : i32
    %c0_i32_1 = arith.constant 0 : i32
    return %c0_i32, %c0_i32_0 : i32, i32
  }
  func.func @transform_5(%arg0: i32) -> (i32, i32) {
    %c0_i32 = arith.constant 0 : i32
    %c0_i32_0 = arith.constant 0 : i32
    return %arg0, %c0_i32 : i32, i32
  }
}

</mosaic_0001>

<bundles_post_ra>
// kernel: tile.13
= control target key start
LH: loop header
LB: loop body
LE: loop exit
PB: predicated region body
PF: predicated region fallthrough
CT: control target
= control target key end

     0   :  { %s22_s0 = inlined_call_operand.vmem [shape: f32[32], index: 0, kind: input, shape index: {}]   ;;  %s23_s1 = inlined_call_operand.vmem [shape: f32[4,32], index: 1, kind: output, shape index: {}]  }
   0x1   :  { %v4_v0 = vld [vmem:[%s22_s0] ss:$0 sm:$0xff] }
   0x2   :  { %5 = vst [vmem:[%s23_s1] sm:$0xf] %v4_v0 }

// kernel: pointwise_feedforward.1
= control target key start
LH: loop header
LB: loop body
LE: loop exit
PB: predicated region body
PF: predicated region fallthrough
CT: control target
= control target key end

     0   :  { %v371_v0 = vmov 0.0|0.0   ;;  %vm372_vm0 = vmmov 0   ;;  %v373_v4 = vmov 0.0   ;;  %s528_s1 = inlined_call_operand.vmem [shape: f32[128,128], index: 1, kind: input, shape index: {}]   ;;  %s529_s3 = inlined_call_operand.vmem [shape: f32[128,128], index: 3, kind: input, shape index: {}]   ;;  %s530_s0 = inlined_call_operand.vmem [shape: f32[4,128], index: 0, kind: input, shape index: {}]   ;;  %s531_s2 = inlined_call_operand.vmem [shape: f32[1,128], index: 2, kind: input, shape index: {}]   ;;  %s532_s4 = inlined_call_operand.vmem [shape: f32[1,128], index: 4, kind: input, shape index: {}]   ;;  %s533_s5 = inlined_call_operand.vmem [shape: f32[4,128], index: 5, kind: output, shape index: {}]  }
   0x1   :  { %320 = vmatprep.subr.bf16.mxu0 %v371_v0  ;;  %v21_v1 = vld [vmem:[%s528_s1] sm:$0xff]  ;;  %v22_v2 = vld [vmem:[%s528_s1 + $0x8] sm:$0xff]  ;;  %v23_v3 = vld [vmem:[%s528_s1 + $0x10] sm:$0xff]  ;;  %282 = vmatprep.mubr.msk.f32.mxu0 %vm372_vm0, %v373_v4 }
   0x2   :  { %v321_v5 = vpack.c.bf16 %v22_v2, %v21_v1  ;;  %v24_v6 = vld [vmem:[%s528_s1 + $0x18] sm:$0xff]  ;;  %344 = vmatprep.subr.bf16.mxu1 %v371_v0  ;;  %317 = vmatprep.mubr.msk.f32.mxu1 %vm372_vm0, %v373_v4  ;;  %v25_v8 = vld [vmem:[%s528_s1 + $0x20] sm:$0xff]  ;;  %v26_v9 = vld [vmem:[%s528_s1 + $0x28] sm:$0xff] }
   0x3   :  { %v324_v7 = vpack.c.bf16 %v24_v6, %v23_v3  ;;  %v115_v10 = vld [vmem:[%s529_s3] sm:$0xff]  ;;  %v116_v11 = vld [vmem:[%s529_s3 + $0x8] sm:$0xff]  ;;  %v117_v12 = vld [vmem:[%s529_s3 + $0x10] sm:$0xff]  ;;  %v327_v14 = vpack.c.bf16 %v26_v9, %v25_v8 }
   0x4   :  { %322 = vmatpush3.bf16.msra.mxu0 %v321_v5  ;;  %v118_v13 = vld [vmem:[%s529_s3 + $0x18] sm:$0xff]  ;;  %v345_v15 = vpack.c.bf16 %v116_v11, %v115_v10  ;;  %v27_v16 = vld [vmem:[%s528_s1 + $0x30] sm:$0xff]  ;;  %v119_v19 = vld [vmem:[%s529_s3 + $0x20] sm:$0xff] }
   0x5   :  { %323 = vmatprep.subr.bf16.mxu0 %v371_v0  ;;  %v28_v17 = vld [vmem:[%s528_s1 + $0x38] sm:$0xff]  ;;  %v348_v18 = vpack.c.bf16 %v118_v13, %v117_v12  ;;  %v120_v20 = vld [vmem:[%s529_s3 + $0x28] sm:$0xff]  ;;  %v29_v22 = vld [vmem:[%s528_s1 + $0x40] sm:$0xff] }
   0x6   :  { %346 = vmatpush3.bf16.msra.mxu1 %v345_v15  ;;  %v330_v21 = vpack.c.bf16 %v28_v17, %v27_v16  ;;  %v30_v23 = vld [vmem:[%s528_s1 + $0x48] sm:$0xff]  ;;  %v351_v24 = vpack.c.bf16 %v120_v20, %v119_v19  ;;  %v121_v25 = vld [vmem:[%s529_s3 + $0x30] sm:$0xff]  ;;  %v122_v26 = vld [vmem:[%s529_s3 + $0x38] sm:$0xff] }
   0x7   :  { %347 = vmatprep.subr.bf16.mxu1 %v371_v0  ;;  %v333_v27 = vpack.c.bf16 %v30_v23, %v29_v22  ;;  %v31_v28 = vld [vmem:[%s528_s1 + $0x50] sm:$0xff]  ;;  %v32_v29 = vld [vmem:[%s528_s1 + $0x58] sm:$0xff]  ;;  %v354_v30 = vpack.c.bf16 %v122_v26, %v121_v25  ;;  %v123_v31 = vld [vmem:[%s529_s3 + $0x40] sm:$0xff] }
   0x8   :  { %325 = vmatpush3.bf16.msra.mxu0 %v324_v7  ;;  %v124_v32 = vld [vmem:[%s529_s3 + $0x48] sm:$0xff]  ;;  %v336_v33 = vpack.c.bf16 %v32_v29, %v31_v28  ;;  %v33_v34 = vld [vmem:[%s528_s1 + $0x60] sm:$0xff]  ;;  %v125_v37 = vld [vmem:[%s529_s3 + $0x50] sm:$0xff] }
   0x9   :  { %326 = vmatprep.subr.bf16.mxu0 %v371_v0  ;;  %v34_v35 = vld [vmem:[%s528_s1 + $0x68] sm:$0xff]  ;;  %v357_v36 = vpack.c.bf16 %v124_v32, %v123_v31  ;;  %v126_v38 = vld [vmem:[%s529_s3 + $0x58] sm:$0xff]  ;;  %v35_v40 = vld [vmem:[%s528_s1 + $0x70] sm:$0xff] }
   0xa   :  { %349 = vmatpush3.bf16.msra.mxu1 %v348_v18  ;;  %v339_v39 = vpack.c.bf16 %v34_v35, %v33_v34  ;;  %v36_v41 = vld [vmem:[%s528_s1 + $0x78] sm:$0xff]  ;;  %v360_v42 = vpack.c.bf16 %v126_v38, %v125_v37  ;;  %v127_v43 = vld [vmem:[%s529_s3 + $0x60] sm:$0xff]  ;;  %v128_v44 = vld [vmem:[%s529_s3 + $0x68] sm:$0xff] }
   0xb   :  { %350 = vmatprep.subr.bf16.mxu1 %v371_v0  ;;  %v342_v45 = vpack.c.bf16 %v36_v41, %v35_v40  ;;  %v363_v46 = vpack.c.bf16 %v128_v44, %v127_v43  ;;  %v20_v47 = vld [vmem:[%s530_s0] sm:$0xf]  ;;  %v129_v48 = vld [vmem:[%s529_s3 + $0x70] sm:$0xff]  ;;  %v130_v49 = vld [vmem:[%s529_s3 + $0x78] sm:$0xff] }
   0xc   :  { %328 = vmatpush3.bf16.msra.mxu0 %v327_v14  ;;  %v366_v50 = vpack.c.bf16 %v130_v49, %v129_v48  ;;  %v214_v51 = vld [vmem:[%s531_s2] ss:$0 sm:$0xff] }
   0xd   :  { %329 = vmatprep.subr.bf16.mxu0 %v371_v0  ;;  %v215_v56 = vld [vmem:[%s532_s4] ss:$0 sm:$0xff] }
   0xe   :  { %352 = vmatpush3.bf16.msra.mxu1 %v351_v24 }
   0xf   :  { %353 = vmatprep.subr.bf16.mxu1 %v371_v0 }
  0x10   :  { %331 = vmatpush3.bf16.msra.mxu0 %v330_v21 }
  0x11   :  { %332 = vmatprep.subr.bf16.mxu0 %v371_v0 }
  0x12   :  { %355 = vmatpush3.bf16.msra.mxu1 %v354_v30 }
  0x13   :  { %356 = vmatprep.subr.bf16.mxu1 %v371_v0 }
  0x14   :  { %334 = vmatpush3.bf16.msra.mxu0 %v333_v27 }
  0x15   :  { %335 = vmatprep.subr.bf16.mxu0 %v371_v0 }
  0x16   :  { %358 = vmatpush3.bf16.msra.mxu1 %v357_v36 }
  0x17   :  { %359 = vmatprep.subr.bf16.mxu1 %v371_v0 }
  0x18   :  { %337 = vmatpush3.bf16.msra.mxu0 %v336_v33 }
  0x19   :  { %338 = vmatprep.subr.bf16.mxu0 %v371_v0 }
  0x1a   :  { %361 = vmatpush3.bf16.msra.mxu1 %v360_v42 }
  0x1b   :  { %362 = vmatprep.subr.bf16.mxu1 %v371_v0 }
  0x1c   :  { %340 = vmatpush3.bf16.msra.mxu0 %v339_v39 }
  0x1d   :  { %341 = vmatprep.subr.bf16.mxu0 %v371_v0 }
  0x1e   :  { %364 = vmatpush3.bf16.msra.mxu1 %v363_v46 }
  0x1f   :  { %365 = vmatprep.subr.bf16.mxu1 %v371_v0 }
  0x20   :  { %343 = vmatpush3.bf16.msra.mxu0 %v342_v45 }
  0x22   :  { %367 = vmatpush3.bf16.msra.mxu1 %v366_v50 }
  0x23   :  { %283 = vmatmul.mubr.f32.vlgmr.msra.gmra.mrb[0].mxu0 %v20_v47 }
  0xf6   :  { %v110_v52 = vpop.f32.mrb[0].mxu0 }
  0xf7   :  { %v111_v53 = vadd.f32 %v214_v51, %v110_v52  ;;  %v284_v54 = vpop.f32.mrb[1].mxu0 }
  0xf9   :  { %v114_v55 = vmax.f32 %v111_v53, 0.0 }
  0xfb   :  { %318 = vmatmul.mubr.f32.vlgmr.msra.gmra.mrb[0].mxu1 %v114_v55 }
 0x1ce   :  { %v204_v57 = vpop.f32.mrb[0].mxu1 }
 0x1cf   :  { %v205_v58 = vadd.f32 %v215_v56, %v204_v57  ;;  %v319_v59 = vpop.f32.mrb[1].mxu1 }
 0x1d1   :  { %v208_v60 = vadd.f32 %v205_v58, %v20_v47 }
 0x1d3   :  { %209 = vst [vmem:[%s533_s5] sm:$0xf] %v208_v60 }

</bundles_post_ra>
